<compile_context>
chip_gen: v7x
topology: tpu7x:2x2x1
jax: 0.10.0
libtpu: 0.0.40
codegen_flags: <defaults>
</compile_context>

<pallas_src>
import functools
import math

import jax
import jax.numpy as jnp
from jax import lax
from jax.experimental import pallas as pl
from jax.experimental.pallas import tpu as pltpu

_LANES = 512          # lane-dense last dim (multiple of 128)
_MAX_BLK_ROWS = 512   # 512 x 512 x 4 B = 1 MiB per f32 block


def _mix32(h):
    """Murmur3 finalizer: strong avalanche, VPU-only (xor/shift/mul on u32)."""
    h = h ^ (h >> 16)
    h = h * jnp.uint32(0x85EBCA6B)
    h = h ^ (h >> 13)
    h = h * jnp.uint32(0xC2B2AE35)
    h = h ^ (h >> 16)
    return h


def _noise_kernel(seed_ref, x_ref, o_ref, *, mean, std):
    blk_r, lanes = x_ref.shape
    pid = pl.program_id(0).astype(jnp.uint32)
    seed = seed_ref[0].astype(jnp.uint32)

    # Global element index of every element in this tile (hash counter).
    row = lax.broadcasted_iota(jnp.uint32, (blk_r, lanes), 0)
    col = lax.broadcasted_iota(jnp.uint32, (blk_r, lanes), 1)
    idx = (pid * jnp.uint32(blk_r) + row) * jnp.uint32(lanes) + col

    # Two independent 32-bit hash streams -> four 16-bit uniforms / element.
    h1 = _mix32(idx * jnp.uint32(0x9E3779B1) + seed)
    h2 = _mix32(idx * jnp.uint32(0x85EBCA77) + (seed ^ jnp.uint32(0x7F4A7C15)))

    mask = jnp.uint32(0xFFFF)
    s = ((h1 & mask) + (h1 >> 16) + (h2 & mask) + (h2 >> 16)).astype(jnp.int32)
    # Irwin-Hall(4): sum of 4 U(0,1) has mean 2, var 1/3  ->  z ~ N(0, 1).
    u4 = s.astype(jnp.float32) * jnp.float32(1.0 / 65536.0)
    z = (u4 - jnp.float32(2.0)) * jnp.float32(math.sqrt(3.0))

    noise = jnp.float32(mean) + jnp.float32(std) * z
    o_ref[...] = (x_ref[...].astype(jnp.float32) + noise).astype(o_ref.dtype)


def noise_layer(x: jax.Array,
                seed: int = 0,
                mean: float = 0.0,
                std: float = 0.01,
                training: bool = True) -> jax.Array:
    """Pallas implementation of NoiseLayer.forward."""
    if not training:
        # eval mode: identity (matches PyTorch self.training == False branch)
        return x

    orig_shape = x.shape
    total = math.prod(orig_shape)

    # Lane-dense slab: (rows, 512), rows padded to a multiple of the block
    # row count (itself a multiple of 8). Padded tail is sliced off below.
    rows = -(-total // _LANES)
    blk_r = min(_MAX_BLK_ROWS, ((rows + 7) // 8) * 8)
    rows_pad = ((rows + blk_r - 1) // blk_r) * blk_r
    pad = rows_pad * _LANES - total

    xf = x.reshape(total)
    if pad:
        xf = jnp.pad(xf, (0, pad))
    x2d = xf.reshape(rows_pad, _LANES)

    seed_arr = jnp.asarray([seed], dtype=jnp.int32)
    kernel = functools.partial(_noise_kernel, mean=mean, std=std)

    out2d = pl.pallas_call(
        kernel,
        out_shape=jax.ShapeDtypeStruct((rows_pad, _LANES), x.dtype),
        grid_spec=pltpu.PrefetchScalarGridSpec(
            num_scalar_prefetch=1,                 # seed lands in SMEM
            grid=(rows_pad // blk_r,),
            in_specs=[pl.BlockSpec((blk_r, _LANES),
                                   lambda i, seed_ref: (i, 0))],
            out_specs=pl.BlockSpec((blk_r, _LANES),
                                   lambda i, seed_ref: (i, 0)),
        ),
        compiler_params=pltpu.CompilerParams(
            dimension_semantics=("parallel",),     # shard grid across v7x TCs
            vmem_limit_bytes=32 * 1024 * 1024,     # plenty of headroom: ~4 MiB live
        ),
    )(seed_arr, x2d)

    out = out2d.reshape(rows_pad * _LANES)
    if pad:
        out = out[:total]
    return out.reshape(orig_shape)


if __name__ == "__main__":
    key = jax.random.PRNGKey(0)
    # NCHW input, small shape consistent with a conv-net feature map.
    x = jax.random.normal(key, (2, 4, 16, 16), dtype=jnp.float32)

    mean, std = 0.0, 0.01

    # training-mode path (the Pallas hot path)
    y_train = jax.block_until_ready(
        noise_layer(x, seed=42, mean=mean, std=std, training=True))
    assert y_train.shape == x.shape and y_train.dtype == x.dtype

    # noise should be small, roughly zero-mean, roughly std=0.01
    diff = y_train - x
    assert float(jnp.max(jnp.abs(diff))) < 0.05, "noise magnitude out of range"
    assert abs(float(jnp.mean(diff))) < 3e-3, "noise mean off"
    d_std = float(jnp.std(diff))
    assert 0.006 < d_std < 0.014, f"noise std off: {d_std}"

    # eval-mode path is identity
    y_eval = jax.block_until_ready(
        noise_layer(x, seed=42, mean=mean, std=std, training=False))
    assert bool(jnp.all(y_eval == x))

    print("KERNEL_OK")
</pallas_src>

<mosaic_0001>
module attributes {stable_mosaic.version = 11 : i64} {
  func.func @_noise_kernel(%arg0: i32, %arg1: memref<1xi32, #tpu.memory_space<smem>>, %arg2: memref<8x512xf32, #tpu.memory_space<vmem>>, %arg3: memref<8x512xf32, #tpu.memory_space<vmem>>) attributes {dimension_semantics = [#tpu.dimension_semantics<parallel>], iteration_bounds = array<i64: 1>, scalar_prefetch = 1 : i64, scratch_operands = 0 : i64, tpu.core_type = #tpu.core_type<tc>, window_params = [{transform_indices = @transform_0, window_bounds = array<i64: 8, 512>}, {transform_indices = @transform_1, window_bounds = array<i64: 8, 512>}]} {
    %c0 = arith.constant 0 : index
    %0 = memref.load %arg1[%c0] : memref<1xi32, #tpu.memory_space<smem>>
    %1 = tpu.iota {dimensions = array<i32: 0>} : vector<8x512xi32>
    %2 = tpu.iota {dimensions = array<i32: 1>} : vector<8x512xi32>
    %c8_i32 = arith.constant 8 : i32
    %3 = arith.muli %arg0, %c8_i32 : i32
    %4 = vector.broadcast %3 : i32 to vector<8x512xi32>
    %5 = arith.addi %4, %1 : vector<8x512xi32>
    %c512_i32 = arith.constant 512 : i32
    %6 = vector.broadcast %c512_i32 : i32 to vector<8x512xi32>
    %7 = arith.muli %5, %6 : vector<8x512xi32>
    %8 = arith.addi %7, %2 : vector<8x512xi32>
    %c-1640531535_i32 = arith.constant -1640531535 : i32
    %9 = vector.broadcast %c-1640531535_i32 : i32 to vector<8x512xi32>
    %10 = arith.muli %8, %9 : vector<8x512xi32>
    %11 = vector.broadcast %0 : i32 to vector<8x512xi32>
    %12 = arith.addi %10, %11 : vector<8x512xi32>
    %c16_i32 = arith.constant 16 : i32
    %13 = vector.broadcast %c16_i32 : i32 to vector<8x512xi32>
    %14 = arith.shrui %12, %13 : vector<8x512xi32>
    %15 = arith.xori %12, %14 : vector<8x512xi32>
    %c-2048144789_i32 = arith.constant -2048144789 : i32
    %16 = vector.broadcast %c-2048144789_i32 : i32 to vector<8x512xi32>
    %17 = arith.muli %15, %16 : vector<8x512xi32>
    %c13_i32 = arith.constant 13 : i32
    %18 = vector.broadcast %c13_i32 : i32 to vector<8x512xi32>
    %19 = arith.shrui %17, %18 : vector<8x512xi32>
    %20 = arith.xori %17, %19 : vector<8x512xi32>
    %c-1028477387_i32 = arith.constant -1028477387 : i32
    %21 = vector.broadcast %c-1028477387_i32 : i32 to vector<8x512xi32>
    %22 = arith.muli %20, %21 : vector<8x512xi32>
    %c16_i32_0 = arith.constant 16 : i32
    %23 = vector.broadcast %c16_i32_0 : i32 to vector<8x512xi32>
    %24 = arith.shrui %22, %23 : vector<8x512xi32>
    %25 = arith.xori %22, %24 : vector<8x512xi32>
    %c-2048144777_i32 = arith.constant -2048144777 : i32
    %26 = vector.broadcast %c-2048144777_i32 : i32 to vector<8x512xi32>
    %27 = arith.muli %8, %26 : vector<8x512xi32>
    %c2135587861_i32 = arith.constant 2135587861 : i32
    %28 = arith.xori %0, %c2135587861_i32 : i32
    %29 = vector.broadcast %28 : i32 to vector<8x512xi32>
    %30 = arith.addi %27, %29 : vector<8x512xi32>
    %c16_i32_1 = arith.constant 16 : i32
    %31 = vector.broadcast %c16_i32_1 : i32 to vector<8x512xi32>
    %32 = arith.shrui %30, %31 : vector<8x512xi32>
    %33 = arith.xori %30, %32 : vector<8x512xi32>
    %c-2048144789_i32_2 = arith.constant -2048144789 : i32
    %34 = vector.broadcast %c-2048144789_i32_2 : i32 to vector<8x512xi32>
    %35 = arith.muli %33, %34 : vector<8x512xi32>
    %c13_i32_3 = arith.constant 13 : i32
    %36 = vector.broadcast %c13_i32_3 : i32 to vector<8x512xi32>
    %37 = arith.shrui %35, %36 : vector<8x512xi32>
    %38 = arith.xori %35, %37 : vector<8x512xi32>
    %c-1028477387_i32_4 = arith.constant -1028477387 : i32
    %39 = vector.broadcast %c-1028477387_i32_4 : i32 to vector<8x512xi32>
    %40 = arith.muli %38, %39 : vector<8x512xi32>
    %c16_i32_5 = arith.constant 16 : i32
    %41 = vector.broadcast %c16_i32_5 : i32 to vector<8x512xi32>
    %42 = arith.shrui %40, %41 : vector<8x512xi32>
    %43 = arith.xori %40, %42 : vector<8x512xi32>
    %c65535_i32 = arith.constant 65535 : i32
    %44 = vector.broadcast %c65535_i32 : i32 to vector<8x512xi32>
    %45 = arith.andi %25, %44 : vector<8x512xi32>
    %c16_i32_6 = arith.constant 16 : i32
    %46 = vector.broadcast %c16_i32_6 : i32 to vector<8x512xi32>
    %47 = arith.shrui %25, %46 : vector<8x512xi32>
    %48 = arith.addi %45, %47 : vector<8x512xi32>
    %c65535_i32_7 = arith.constant 65535 : i32
    %49 = vector.broadcast %c65535_i32_7 : i32 to vector<8x512xi32>
    %50 = arith.andi %43, %49 : vector<8x512xi32>
    %51 = arith.addi %48, %50 : vector<8x512xi32>
    %c16_i32_8 = arith.constant 16 : i32
    %52 = vector.broadcast %c16_i32_8 : i32 to vector<8x512xi32>
    %53 = arith.shrui %43, %52 : vector<8x512xi32>
    %54 = arith.addi %51, %53 : vector<8x512xi32>
    %55 = arith.sitofp %54 : vector<8x512xi32> to vector<8x512xf32>
    %cst = arith.constant 1.52587891E-5 : f32
    %56 = vector.broadcast %cst : f32 to vector<8x512xf32>
    %57 = arith.mulf %55, %56 : vector<8x512xf32>
    %cst_9 = arith.constant 2.000000e+00 : f32
    %58 = vector.broadcast %cst_9 : f32 to vector<8x512xf32>
    %59 = arith.subf %57, %58 : vector<8x512xf32>
    %cst_10 = arith.constant 1.73205078 : f32
    %60 = vector.broadcast %cst_10 : f32 to vector<8x512xf32>
    %61 = arith.mulf %59, %60 : vector<8x512xf32>
    %cst_11 = arith.constant 0.00999999977 : f32
    %62 = vector.broadcast %cst_11 : f32 to vector<8x512xf32>
    %63 = arith.mulf %62, %61 : vector<8x512xf32>
    %cst_12 = arith.constant 0.000000e+00 : f32
    %64 = vector.broadcast %cst_12 : f32 to vector<8x512xf32>
    %65 = arith.addf %64, %63 : vector<8x512xf32>
    %c0_13 = arith.constant 0 : index
    %c0_14 = arith.constant 0 : index
    %66 = vector.load %arg2[%c0_13, %c0_14] : memref<8x512xf32, #tpu.memory_space<vmem>>, vector<8x512xf32>
    %67 = arith.addf %66, %65 : vector<8x512xf32>
    %c0_15 = arith.constant 0 : index
    %c0_16 = arith.constant 0 : index
    %68 = vector.load %arg3[%c0_15, %c0_16] : memref<8x512xf32, #tpu.memory_space<vmem>>, vector<8x512xf32>
    tpu.vector_store %arg3[%c0_15, %c0_16], %67 {strides = array<i32>} : memref<8x512xf32, #tpu.memory_space<vmem>>, vector<8x512xf32>,
    return
  }
  func.func @transform_0(%arg0: i32, %arg1: memref<1xi32, #tpu.memory_space<smem>>) -> (i32, i32) {
    %c0_i32 = arith.constant 0 : i32
    %c0_i32_0 = arith.constant 0 : i32
    return %arg0, %c0_i32 : i32, i32
  }
  func.func @transform_1(%arg0: i32, %arg1: memref<1xi32, #tpu.memory_space<smem>>) -> (i32, i32) {
    %c0_i32 = arith.constant 0 : i32
    %c0_i32_0 = arith.constant 0 : i32
    return %arg0, %c0_i32 : i32, i32
  }
}

</mosaic_0001>

<bundles_post_ra>
// kernel: tpu_custom_call.1
= control target key start
LH: loop header
LB: loop body
LE: loop exit
PB: predicated region body
PF: predicated region fallthrough
CT: control target
= control target key end

     0   :  { %8 = vsyncpa [#allocation5], 0  ;;  %s302_s0 = inlined_call_operand.<no memory space> [shape: s32[1], index: 0, kind: input, shape index: {}]   ;;  %s303_s1 = inlined_call_operand.hbm [shape: f32[8,512], index: 1, kind: input, shape index: {}]   ;;  %s304_s2 = inlined_call_operand.hbm [shape: f32[8,512], index: 2, kind: output, shape index: {}]  }
   0x1   :  { %9 = vsyncpa [#allocation6], 0  ;;  %s255_s9 = smov [#allocation4]   ;;  %s207_s13 = scalar_lea.hbm %s303_s1, 512 }
   0x2   :  { %s16_s10 = sshll.u32 %s255_s9, 4  ;;  %p208_p0 = scmp.ne.s32.totalorder %s303_s1, %s207_s13  ;;  %s17_s10 = int_to_ptr.vmem [resolvable:$true] %s16_s10 }
   0x3   :  { %p211_p1 = scmp.lt.u32.totalorder %s207_s13, %s303_s1 }
   0x5   :  { %p213_p2 = pnand %p211_p1, %p208_p0 }
   0x7   :  { %216 = shalt.err (!%p213_p2)
}
   0x8   :  { %s217_s18 = scalar_lea.vmem %s17_s10, 512  ;;  %p222_p4 = scmp.lt.s32.totalorder %s17_s10, %s17_s10 }
   0x9   :  { %p218_p3 = scmp.ne.s32.totalorder %s17_s10, %s217_s18  ;;  %p223_p5 = scmp.lt.s32.totalorder %s217_s18, %s217_s18 }
   0xb   :  { %p224_p6 = por %p223_p5, %p222_p4 }
   0xd   :  { %p225_p7 = pnand %p224_p6, %p218_p3 }
   0xf   :  { %228 = shalt.err (!%p225_p7)
}
  0x10   :  { %19 = dma.hbm_to_vmem [thread:$0]  %s303_s1, 512, %s17_s10, [#allocation5]  }
  0x11   :  { %251 = dma.done.wait [#allocation5], 512  }
  0x12   :  { %252 = vsyncadd [#allocation5], 4294966784  ;;  %v24_v0 = vlaneseq  ;;  %s84_s23 = sxor.u32 2135587861, %s302_s0  ;;  %v43_v10 = vstv %s302_s0  ;;  %s256_s0 = smov [#allocation7]  }
  0x13   :  { %v85_v11 = vstv %s84_s23  ;;  %s192_s1 = sshll.u32 %s256_s0, 4  ;;  %s193_s1 = int_to_ptr.vmem [resolvable:$true] %s192_s1 }
  0x14   :  { %v25_v1 = vshrl.u32 %v24_v0, 7  ;;  %v27_v2 = vand.u32 127, %v24_v0  ;;  %s229_s26 = scalar_lea.vmem %s193_s1, 512  ;;  %p234_p9 = scmp.lt.s32.totalorder %s193_s1, %s193_s1 }
  0x15   :  { %p230_p8 = scmp.ne.s32.totalorder %s193_s1, %s229_s26  ;;  %p235_p10 = scmp.lt.s32.totalorder %s229_s26, %s229_s26 }
  0x16   :  { %v34_v3 = vmul.u32 512, %v25_v1  ;;  %v28_v4 = vadd.s32 128, %v27_v2  ;;  %v29_v5 = vadd.s32 256, %v27_v2  ;;  %v30_v6 = vadd.s32 384, %v27_v2 }
  0x17   :  { %p236_p11 = por %p235_p10, %p234_p9 }
  0x18   :  { %v35_v7 = vadd.s32 %v34_v3, %v27_v2  ;;  %v36_v8 = vadd.s32 %v34_v3, %v28_v4  ;;  %v37_v9 = vadd.s32 %v34_v3, %v29_v5  ;;  %v38_v12 = vadd.s32 %v34_v3, %v30_v6 }
  0x19   :  { %p237_p12 = pnand %p236_p11, %p230_p8 }
  0x1a   :  { %v39_v13 = vmul.u32 2654435761, %v35_v7  ;;  %v80_v14 = vmul.u32 2246822519, %v35_v7 }
  0x1b   :  { %v40_v15 = vmul.u32 2654435761, %v36_v8  ;;  %v81_v16 = vmul.u32 2246822519, %v36_v8 }
  0x1c   :  { %v44_v17 = vadd.s32 %v43_v10, %v39_v13  ;;  %v86_v18 = vadd.s32 %v85_v11, %v80_v14  ;;  %v41_v19 = vmul.u32 2654435761, %v37_v9  ;;  %v82_v20 = vmul.u32 2246822519, %v37_v9 }
  0x1d   :  { %v45_v21 = vadd.s32 %v43_v10, %v40_v15  ;;  %v87_v22 = vadd.s32 %v85_v11, %v81_v16  ;;  %v42_v23 = vmul.u32 2654435761, %v38_v12  ;;  %v83_v24 = vmul.u32 2246822519, %v38_v12 }
  0x1e   :  { %v48_v25 = vshrl.u32 %v44_v17, 16  ;;  %v90_v26 = vshrl.u32 %v86_v18, 16  ;;  %v46_v27 = vadd.s32 %v43_v10, %v41_v19  ;;  %v88_v28 = vadd.s32 %v85_v11, %v82_v20 }
  0x1f   :  { %v49_v29 = vshrl.u32 %v45_v21, 16  ;;  %v91_v30 = vshrl.u32 %v87_v22, 16  ;;  %v47_v31 = vadd.s32 %v43_v10, %v42_v23  ;;  %v89_v32 = vadd.s32 %v85_v11, %v83_v24 }
  0x20   :  { %v52_v33 = vxor.u32 %v48_v25, %v44_v17  ;;  %v94_v34 = vxor.u32 %v90_v26, %v86_v18  ;;  %v50_v35 = vshrl.u32 %v46_v27, 16  ;;  %v92_v36 = vshrl.u32 %v88_v28, 16 }
  0x21   :  { %v53_v37 = vxor.u32 %v49_v29, %v45_v21  ;;  %v95_v38 = vxor.u32 %v91_v30, %v87_v22  ;;  %v51_v39 = vshrl.u32 %v47_v31, 16  ;;  %v93_v40 = vshrl.u32 %v89_v32, 16 }
  0x22   :  { %v56_v41 = vmul.u32 2246822507, %v52_v33  ;;  %v98_v42 = vmul.u32 2246822507, %v94_v34  ;;  %v54_v43 = vxor.u32 %v50_v35, %v46_v27  ;;  %v96_v44 = vxor.u32 %v92_v36, %v88_v28 }
  0x23   :  { %v57_v45 = vmul.u32 2246822507, %v53_v37  ;;  %v99_v46 = vmul.u32 2246822507, %v95_v38  ;;  %v55_v47 = vxor.u32 %v51_v39, %v47_v31  ;;  %v97_v48 = vxor.u32 %v93_v40, %v89_v32 }
  0x24   :  { %v60_v49 = vshrl.u32 %v56_v41, 13  ;;  %v102_v50 = vshrl.u32 %v98_v42, 13  ;;  %v58_v51 = vmul.u32 2246822507, %v54_v43  ;;  %v100_v52 = vmul.u32 2246822507, %v96_v44 }
  0x25   :  { %v61_v53 = vshrl.u32 %v57_v45, 13  ;;  %v103_v54 = vshrl.u32 %v99_v46, 13  ;;  %v59_v55 = vmul.u32 2246822507, %v55_v47  ;;  %v101_v56 = vmul.u32 2246822507, %v97_v48 }
  0x26   :  { %v64_v57 = vxor.u32 %v60_v49, %v56_v41  ;;  %v106_v58 = vxor.u32 %v102_v50, %v98_v42  ;;  %v62_v59 = vshrl.u32 %v58_v51, 13  ;;  %v104_v60 = vshrl.u32 %v100_v52, 13 }
  0x27   :  { %v65_v61 = vxor.u32 %v61_v53, %v57_v45  ;;  %v107_v62 = vxor.u32 %v103_v54, %v99_v46  ;;  %v63_v63 = vshrl.u32 %v59_v55, 13  ;;  %v105_v0 = vshrl.u32 %v101_v56, 13 }
  0x28   :  { %v68_v1 = vmul.u32 3266489909, %v64_v57  ;;  %v110_v2 = vmul.u32 3266489909, %v106_v58  ;;  %v66_v3 = vxor.u32 %v62_v59, %v58_v51  ;;  %v108_v4 = vxor.u32 %v104_v60, %v100_v52 }
  0x29   :  { %v69_v5 = vmul.u32 3266489909, %v65_v61  ;;  %v111_v6 = vmul.u32 3266489909, %v107_v62  ;;  %v67_v7 = vxor.u32 %v63_v63, %v59_v55  ;;  %v109_v8 = vxor.u32 %v105_v0, %v101_v56 }
  0x2a   :  { %v72_v9 = vshrl.u32 %v68_v1, 16  ;;  %v114_v10 = vshrl.u32 %v110_v2, 16  ;;  %v70_v11 = vmul.u32 3266489909, %v66_v3  ;;  %v112_v12 = vmul.u32 3266489909, %v108_v4 }
  0x2b   :  { %v73_v13 = vshrl.u32 %v69_v5, 16  ;;  %v115_v14 = vshrl.u32 %v111_v6, 16  ;;  %v71_v15 = vmul.u32 3266489909, %v67_v7  ;;  %v113_v16 = vmul.u32 3266489909, %v109_v8 }
  0x2c   :  { %v76_v17 = vxor.u32 %v72_v9, %v68_v1  ;;  %v118_v18 = vxor.u32 %v114_v10, %v110_v2  ;;  %v74_v19 = vshrl.u32 %v70_v11, 16  ;;  %v116_v20 = vshrl.u32 %v112_v12, 16  ;;  %v174_v3 = vld [vmem:[#allocation4] sm:$0xff]  ;;  %v175_v7 = vld [vmem:[#allocation4 + $0x8] sm:$0xff] }
  0x2d   :  { %v77_v21 = vxor.u32 %v73_v13, %v69_v5  ;;  %v119_v22 = vxor.u32 %v115_v14, %v111_v6  ;;  %v75_v23 = vshrl.u32 %v71_v15, 16  ;;  %v117_v24 = vshrl.u32 %v113_v16, 16  ;;  %v176_v14 = vld [vmem:[#allocation4 + $0x10] sm:$0xff] }
  0x2e   :  { %v122_v25 = vand.u32 65535, %v76_v17  ;;  %v126_v26 = vshrl.u32 %v76_v17, 16  ;;  %v134_v27 = vand.u32 65535, %v118_v18  ;;  %v142_v28 = vshrl.u32 %v118_v18, 16  ;;  %v177_v17 = vld [vmem:[#allocation4 + $0x18] sm:$0xff] }
  0x2f   :  { %v123_v29 = vand.u32 65535, %v77_v21  ;;  %v127_v30 = vshrl.u32 %v77_v21, 16  ;;  %v135_v31 = vand.u32 65535, %v119_v22  ;;  %v78_v33 = vxor.u32 %v74_v19, %v70_v11 }
  0x30   :  { %v130_v32 = vadd.s32 %v126_v26, %v122_v25  ;;  %v120_v34 = vxor.u32 %v116_v20, %v112_v12  ;;  %v79_v35 = vxor.u32 %v75_v23, %v71_v15  ;;  %v143_v37 = vshrl.u32 %v119_v22, 16 }
  0x31   :  { %v131_v36 = vadd.s32 %v127_v30, %v123_v29  ;;  %v121_v38 = vxor.u32 %v117_v24, %v113_v16  ;;  %v124_v40 = vand.u32 65535, %v78_v33  ;;  %v128_v41 = vshrl.u32 %v78_v33, 16 }
  0x32   :  { %v138_v39 = vadd.s32 %v134_v27, %v130_v32  ;;  %v136_v42 = vand.u32 65535, %v120_v34  ;;  %v125_v44 = vand.u32 65535, %v79_v35  ;;  %v129_v45 = vshrl.u32 %v79_v35, 16 }
  0x33   :  { %v139_v43 = vadd.s32 %v135_v31, %v131_v36  ;;  %v132_v47 = vadd.s32 %v128_v41, %v124_v40  ;;  %v144_v48 = vshrl.u32 %v120_v34, 16  ;;  %v137_v49 = vand.u32 65535, %v121_v38 }
  0x34   :  { %v146_v46 = vadd.s32 %v142_v28, %v138_v39  ;;  %v133_v51 = vadd.s32 %v129_v45, %v125_v44  ;;  %v145_v52 = vshrl.u32 %v121_v38, 16 }
  0x35   :  { %v147_v50 = vadd.s32 %v143_v37, %v139_v43  ;;  %v140_v54 = vadd.s32 %v136_v42, %v132_v47 }
  0x36   :  { %v150_v53 = vcvt.s32.f32 %v146_v46  ;;  %v141_v56 = vadd.s32 %v137_v49, %v133_v51 }
  0x37   :  { %v151_v55 = vcvt.s32.f32 %v147_v50  ;;  %v148_v58 = vadd.s32 %v144_v48, %v140_v54 }
  0x38   :  { %v154_v57 = vmul.f32 1.5258789e-05, %v150_v53  ;;  %v149_v60 = vadd.s32 %v145_v52, %v141_v56 }
  0x39   :  { %v155_v59 = vmul.f32 1.5258789e-05, %v151_v55  ;;  %v152_v62 = vcvt.s32.f32 %v148_v58 }
  0x3a   :  { %v201_v61 = vadd.f32 -2.0, %v154_v57  ;;  %v153_v0 = vcvt.s32.f32 %v149_v60 }
  0x3b   :  { %v202_v63 = vadd.f32 -2.0, %v155_v59  ;;  %v156_v2 = vmul.f32 1.5258789e-05, %v152_v62 }
  0x3c   :  { %v162_v1 = vmul.f32 1.7320508, %v201_v61  ;;  %v157_v5 = vmul.f32 1.5258789e-05, %v153_v0 }
  0x3d   :  { %v163_v4 = vmul.f32 1.7320508, %v202_v63  ;;  %v203_v8 = vadd.f32 -2.0, %v156_v2 }
  0x3e   :  { %v166_v6 = vmul.f32 0.01, %v162_v1  ;;  %v204_v10 = vadd.f32 -2.0, %v157_v5 }
  0x3f   :  { %v167_v9 = vmul.f32 0.01, %v163_v4  ;;  %v164_v12 = vmul.f32 1.7320508, %v203_v8 }
  0x40   :  { %v178_v11 = vadd.f32 %v174_v3, %v166_v6  ;;  %v165_v15 = vmul.f32 1.7320508, %v204_v10 }
  0x41   :  { %v179_v13 = vadd.f32 %v175_v7, %v167_v9  ;;  %v168_v16 = vmul.f32 0.01, %v164_v12 }
  0x42   :  { %182 = vst [vmem:[#allocation7] sm:$0xff] %v178_v11  ;;  %v169_v18 = vmul.f32 0.01, %v165_v15 }
  0x43   :  { %183 = vst [vmem:[#allocation7 + $0x8] sm:$0xff] %v179_v13  ;;  %v180_v19 = vadd.f32 %v176_v14, %v168_v16 }
  0x44   :  { %v181_v20 = vadd.f32 %v177_v17, %v169_v18 }
  0x45   :  { %184 = vst [vmem:[#allocation7 + $0x10] sm:$0xff] %v180_v19 }
  0x46   :  { %185 = vst [vmem:[#allocation7 + $0x18] sm:$0xff] %v181_v20 }
  0x47   :  { %240 = shalt.err (!%p237_p12)
}
  0x48   :  { %s241_s29 = scalar_lea.hbm %s304_s2, 512 }
  0x49   :  { %p242_p13 = scmp.ne.s32.totalorder %s304_s2, %s241_s29  ;;  %p245_p0 = scmp.lt.u32.totalorder %s241_s29, %s304_s2 }
  0x4b   :  { %p247_p1 = pnand %p245_p0, %p242_p13 }
  0x4d   :  { %250 = shalt.err (!%p247_p1)
}
  0x4e   :  { %195 = dma.vmem_to_hbm [thread:$0]  %s193_s1, 512, %s304_s2, [#allocation6]  }
  0x4f   :  { %253 = dma.done.wait [#allocation6], 512  }
  0x50   :  { %254 = vsyncadd [#allocation6], 4294966784 }
  0x51   :  { %199 = vsyncpa [#allocation5], 1 }
  0x52   :  { %200 = vsyncpa [#allocation6], 1 }

</bundles_post_ra>
